<compile_context>
chip_gen: v7x
topology: tpu7x:2x2x1
jax: 0.10.0
libtpu: 0.0.40
codegen_flags: <defaults>
</compile_context>

<pallas_src>
import functools

import jax
import jax.numpy as jnp
import numpy as np
from jax.experimental import pallas as pl
from jax.experimental.pallas import tpu as pltpu

EPS = 1e-5


# ---------------------------------------------------------------------------
# Kernels
# ---------------------------------------------------------------------------
def _conv_stats_kernel(x_ref, w_ref, scale_ref, shift_ref, y_ref, stats_ref,
                       *, apply_pre, precision):
    """One B-tile of: [optional per-channel affine+ReLU] -> 3x3 conv -> BN partial stats.

    x_ref     : (tb, H, W*Cin)     lane-dense activation tile
    w_ref     : (3, W*Cin, W*Cout) banded (Toeplitz) weights, one slab per dy tap
    scale_ref : (1, W*Cin)         folded BN scale of the previous layer (tiled over W)
    shift_ref : (1, W*Cin)         folded BN shift of the previous layer
    y_ref     : (tb, H, W*Cout)    raw conv output (pre-BN)
    stats_ref : (1, 2, W*Cout)     per-tile [sum, sum_sq] of the conv output
    """
    tb, h, lin = x_ref.shape
    lout = y_ref.shape[-1]

    x = x_ref[...]
    if apply_pre:
        x = jnp.maximum(x * scale_ref[...][None] + shift_ref[...][None], 0.0)

    # H halo: two zero rows per image (the W halo is absorbed in the band weights).
    zrow = jnp.zeros((tb, 1, lin), jnp.float32)
    xpad = jnp.concatenate([zrow, x, zrow], axis=1)              # (tb, H+2, lin)

    def tap(v, k):
        return jnp.dot(v.reshape(tb * h, lin), w_ref[k],
                       preferred_element_type=jnp.float32,
                       precision=precision)

    acc = (tap(xpad[:, 0:h, :], 0)
           + tap(x, 1)
           + tap(xpad[:, 2:h + 2, :], 2))                        # (tb*H, lout)

    y_ref[...] = acc.reshape(tb, h, lout)

    ssum = jnp.sum(acc, axis=0, keepdims=True)                   # (1, lout)
    ssq = jnp.sum(acc * acc, axis=0, keepdims=True)              # (1, lout)
    stats_ref[...] = jnp.concatenate([ssum, ssq], axis=0)[None]  # (1, 2, lout)


def _bn_relu_kernel(y_ref, scale_ref, shift_ref, o_ref):
    o_ref[...] = jnp.maximum(
        y_ref[...] * scale_ref[...][None] + shift_ref[...][None], 0.0)


# ---------------------------------------------------------------------------
# pallas_call wrappers
# ---------------------------------------------------------------------------
def _conv_pass(x, wband, pre_scale, pre_shift, *, apply_pre, tile_b, precision,
               alias_input):
    bf, h, lin = x.shape
    lout = wband.shape[-1]
    t = bf // tile_b
    kernel = functools.partial(_conv_stats_kernel, apply_pre=apply_pre,
                               precision=precision)
    return pl.pallas_call(
        kernel,
        out_shape=(jax.ShapeDtypeStruct((bf, h, lout), jnp.float32),
                   jax.ShapeDtypeStruct((t, 2, lout), jnp.float32)),
        grid=(t,),
        in_specs=[pl.BlockSpec((tile_b, h, lin), lambda i: (i, 0, 0)),
                  pl.BlockSpec((3, lin, lout), lambda i: (0, 0, 0)),
                  pl.BlockSpec((1, lin), lambda i: (0, 0)),
                  pl.BlockSpec((1, lin), lambda i: (0, 0))],
        out_specs=(pl.BlockSpec((tile_b, h, lout), lambda i: (i, 0, 0)),
                   pl.BlockSpec((1, 2, lout), lambda i: (i, 0, 0))),
        input_output_aliases=({0: 0} if alias_input else {}),
        compiler_params=pltpu.CompilerParams(
            dimension_semantics=("parallel",)),
    )(x, wband, pre_scale, pre_shift)


def _bn_relu_pass(y, scale_row, shift_row, *, tile_b):
    bf, h, lanes = y.shape
    t = bf // tile_b
    return pl.pallas_call(
        _bn_relu_kernel,
        out_shape=jax.ShapeDtypeStruct((bf, h, lanes), jnp.float32),
        grid=(t,),
        in_specs=[pl.BlockSpec((tile_b, h, lanes), lambda i: (i, 0, 0)),
                  pl.BlockSpec((1, lanes), lambda i: (0, 0)),
                  pl.BlockSpec((1, lanes), lambda i: (0, 0))],
        out_specs=pl.BlockSpec((tile_b, h, lanes), lambda i: (i, 0, 0)),
        input_output_aliases={0: 0},
        compiler_params=pltpu.CompilerParams(
            dimension_semantics=("parallel",)),
    )(y, scale_row, shift_row)


# ---------------------------------------------------------------------------
# Host-side helpers (layout plumbing only)
# ---------------------------------------------------------------------------
def _band_weights(w, width):
    """(3, 3, Ci, Co) conv weights -> (3, width*Ci, width*Co) banded matmul weights.

    out[dy, wi*Ci+ci, wo*Co+co] = w[dy, wi-wo+1, ci, co] when |wi-wo| <= 1,
    which folds the dx taps *and* the conv's W zero-padding into one fat,
    lane-dense contraction per dy tap.
    """
    kh, kw, ci, co = w.shape
    assert (kh, kw) == (3, 3)
    # TODO(synk): for large width*channels (band matrix no longer VMEM-friendly),
    # additionally tile the W axis with a 1-column halo per chunk.
    place = np.zeros((kw, width, width), np.float32)
    for dx in range(kw):
        for wo in range(width):
            wi = wo + dx - 1
            if 0 <= wi < width:
                place[dx, wi, wo] = 1.0
    band = jnp.einsum('xab,yxio->yaibo', jnp.asarray(place), w)
    return band.reshape(kh, width * ci, width * co)


def _fold_bn(stats, gamma, beta, count, width):
    """Partial (sum, sum_sq) rows -> folded per-channel (scale, shift) rows (1, width*C)."""
    c = gamma.shape[0]
    s = stats.sum(axis=0).reshape(2, width, c).sum(axis=1)       # (2, C)
    mean = s[0] / count
    var = jnp.maximum(s[1] / count - mean * mean, 0.0)           # biased var (training BN)
    scale = gamma * jax.lax.rsqrt(var + EPS)
    shift = beta - mean * scale
    return jnp.tile(scale, width)[None], jnp.tile(shift, width)[None]


def _pick_tile_b(bf, h, lin, lout):
    # Keep the per-step working set around a few MiB: fits the default scoped
    # VMEM on v5e/v6e and leaves double-buffering headroom on v7x's 64 MiB.
    budget = 8 * 1024 * 1024
    per_b = 4 * h * (4 * lin + 3 * lout)
    cap = max(1, budget // per_b)
    best = 1
    for div in range(1, bf + 1):
        if bf % div == 0 and div <= cap:
            best = div
    return best


@functools.partial(jax.jit, static_argnames=("tile_b", "precision"))
def double_conv_floor_3d(x, params, tile_b=None, precision=None):
    """x: (N, Cin, D, H, W) float32 (PyTorch NCDHW). Returns (N, Cout, D, H, W)."""
    w1, b1, g1, be1, w2, b2, g2, be2 = params
    del b1, b2  # conv biases are exactly cancelled by the training-mode BN mean
    n, cin, d, h, w = x.shape
    cout = w1.shape[-1]
    bf = n * d

    # Layout: fold D into batch, channels last, fold (W, C) into the lane dim.
    xk = jnp.transpose(x, (0, 2, 3, 4, 1)).reshape(bf, h, w * cin)
    wband1 = _band_weights(w1, w)                 # (3, W*Cin,  W*Cout)
    wband2 = _band_weights(w2, w)                 # (3, W*Cout, W*Cout)

    if tile_b is None:
        tile_b = _pick_tile_b(bf, h, w * max(cin, cout), w * cout)
    if bf % tile_b != 0:
        raise ValueError(f"tile_b={tile_b} must divide N*D={bf}")

    count = bf * h * w
    ones = jnp.ones((1, w * cin), jnp.float32)
    zeros = jnp.zeros((1, w * cin), jnp.float32)

    # pass 1: conv1 (raw) + partial BN1 stats
    y1, st1 = _conv_pass(xk, wband1, ones, zeros, apply_pre=False,
                         tile_b=tile_b, precision=precision, alias_input=False)
    scale1, shift1 = _fold_bn(st1, g1, be1, count, w)

    # pass 2: bn1 + relu + conv2 (raw) + partial BN2 stats (in place over y1)
    y2, st2 = _conv_pass(y1, wband2, scale1, shift1, apply_pre=True,
                         tile_b=tile_b, precision=precision, alias_input=True)
    scale2, shift2 = _fold_bn(st2, g2, be2, count, w)

    # pass 3: bn2 + relu (in place over y2)
    out = _bn_relu_pass(y2, scale2, shift2, tile_b=tile_b)

    return out.reshape(n, d, h, w, cout).transpose(0, 4, 1, 2, 3)


# ---------------------------------------------------------------------------
# Pure-JAX reference (full f32, includes the conv biases) and test setup
# ---------------------------------------------------------------------------
def reference(x, params):
    w1, b1, g1, be1, w2, b2, g2, be2 = params
    n, cin, d, h, w = x.shape
    cout = w1.shape[-1]
    xk = jnp.transpose(x, (0, 2, 3, 4, 1)).reshape(n * d, h, w, cin)

    def conv(inp, wgt, b):
        y = jax.lax.conv_general_dilated(
            inp, wgt, (1, 1), 'SAME',
            dimension_numbers=('NHWC', 'HWIO', 'NHWC'),
            precision=jax.lax.Precision.HIGHEST)
        return y + b

    def bn_relu(y, g, be):
        mean = jnp.mean(y, axis=(0, 1, 2), keepdims=True)
        var = jnp.mean((y - mean) ** 2, axis=(0, 1, 2), keepdims=True)
        return jnp.maximum((y - mean) * jax.lax.rsqrt(var + EPS) * g + be, 0.0)

    a = bn_relu(conv(xk, w1, b1), g1, be1)
    a = bn_relu(conv(a, w2, b2), g2, be2)
    return a.reshape(n, d, h, w, cout).transpose(0, 4, 1, 2, 3)


def make_params(key, cin, cout):
    ks = jax.random.split(key, 4)
    fan1 = cin * 3 * 3
    fan2 = cout * 3 * 3
    w1 = jax.random.normal(ks[0], (3, 3, cin, cout), jnp.float32) / np.sqrt(fan1)
    b1 = jax.random.normal(ks[1], (cout,), jnp.float32) * 0.1
    w2 = jax.random.normal(ks[2], (3, 3, cout, cout), jnp.float32) / np.sqrt(fan2)
    b2 = jax.random.normal(ks[3], (cout,), jnp.float32) * 0.1
    g1 = jnp.ones((cout,), jnp.float32) * 1.1
    be1 = jnp.full((cout,), 0.05, jnp.float32)
    g2 = jnp.ones((cout,), jnp.float32) * 0.9
    be2 = jnp.full((cout,), -0.02, jnp.float32)
    return (w1, b1, g1, be1, w2, b2, g2, be2)


if __name__ == "__main__":
    key = jax.random.PRNGKey(0)
    kx, kp = jax.random.split(key)

    # N=2, Cin=4, D=4, H=W=16, Cout=8  ->  B=N*D=8, lane width W*Cout=128
    n, cin, d, h, w = 2, 4, 4, 16, 16
    cout = 8
    x = jax.random.normal(kx, (n, cin, d, h, w), jnp.float32)
    params = make_params(kp, cin, cout)

    # Fast configuration: single-pass bf16 MXU matmuls (default precision),
    # tile_b=2 -> 4 pipelined grid steps per pass.
    out_fast = jax.block_until_ready(double_conv_floor_3d(x, params, tile_b=2))

    # Exactness check of the kernel math: same kernels at HIGHEST precision.
    out_exact = jax.block_until_ready(
        double_conv_floor_3d(x, params, tile_b=2,
                             precision=jax.lax.Precision.HIGHEST))
    ref = jax.block_until_ready(reference(x, params))

    np.testing.assert_allclose(np.asarray(out_exact), np.asarray(ref),
                               rtol=1e-3, atol=1e-3)
    # bf16 single-pass MXU tolerance for the fast path
    np.testing.assert_allclose(np.asarray(out_fast), np.asarray(ref),
                               rtol=5e-2, atol=5e-2)
    print("KERNEL_OK")
</pallas_src>

<mosaic_0001>
module attributes {stable_mosaic.version = 11 : i64} {
  func.func @_conv_stats_kernel(%arg0: i32, %arg1: memref<2x16x64xf32, #tpu.memory_space<vmem>>, %arg2: memref<3x64x128xf32, #tpu.memory_space<vmem>>, %arg3: memref<1x64xf32, #tpu.memory_space<vmem>>, %arg4: memref<1x64xf32, #tpu.memory_space<vmem>>, %arg5: memref<2x16x128xf32, #tpu.memory_space<vmem>>, %arg6: memref<1x2x128xf32, #tpu.memory_space<vmem>>) attributes {dimension_semantics = [#tpu.dimension_semantics<parallel>], iteration_bounds = array<i64: 4>, scalar_prefetch = 0 : i64, scratch_operands = 0 : i64, tpu.core_type = #tpu.core_type<tc>, window_params = [{transform_indices = @transform_0, window_bounds = array<i64: 2, 16, 64>}, {pipeline_mode = #tpu.pipeline_mode<synchronous>, transform_indices = @transform_1, window_bounds = array<i64: 3, 64, 128>}, {pipeline_mode = #tpu.pipeline_mode<synchronous>, transform_indices = @transform_2, window_bounds = array<i64: 1, 64>}, {pipeline_mode = #tpu.pipeline_mode<synchronous>, transform_indices = @transform_3, window_bounds = array<i64: 1, 64>}, {transform_indices = @transform_4, window_bounds = array<i64: 2, 16, 128>}, {transform_indices = @transform_5, window_bounds = array<i64: 1, 2, 128>}]} {
    %c0 = arith.constant 0 : index
    %c0_0 = arith.constant 0 : index
    %c0_1 = arith.constant 0 : index
    %0 = vector.load %arg1[%c0, %c0_0, %c0_1] : memref<2x16x64xf32, #tpu.memory_space<vmem>>, vector<2x16x64xf32>
    %cst = arith.constant 0.000000e+00 : f32
    %1 = vector.broadcast %cst : f32 to vector<2x1x64xf32>
    %2 = tpu.concatenate %1, %0, %1 in 1 : vector<2x1x64xf32>, vector<2x16x64xf32>, vector<2x1x64xf32> -> vector<2x18x64xf32>
    %3 = vector.extract_strided_slice %2 {offsets = [0, 0, 0], sizes = [2, 16, 64], strides = [1, 1, 1]} : vector<2x18x64xf32> to vector<2x16x64xf32>
    %4 = vector.shape_cast %3 : vector<2x16x64xf32> to vector<32x64xf32>
    %c0_2 = arith.constant 0 : index
    %c0_3 = arith.constant 0 : index
    %c0_4 = arith.constant 0 : index
    %5 = vector.load %arg2[%c0_2, %c0_3, %c0_4] : memref<3x64x128xf32, #tpu.memory_space<vmem>>, vector<1x64x128xf32>
    %6 = vector.shape_cast %5 : vector<1x64x128xf32> to vector<64x128xf32>
    %cst_5 = arith.constant dense<0.000000e+00> : vector<32x128xf32>
    %7 = tpu.matmul %4, %6, %cst_5 {dimension_numbers = #tpu.dot_dimension_numbers<[1], [0], [0], [1], [0, 0, 1, 1], [], []>} : vector<32x64xf32>, vector<64x128xf32>, vector<32x128xf32> -> vector<32x128xf32>
    %8 = vector.shape_cast %0 : vector<2x16x64xf32> to vector<32x64xf32>
    %c1 = arith.constant 1 : index
    %c0_6 = arith.constant 0 : index
    %c0_7 = arith.constant 0 : index
    %9 = vector.load %arg2[%c1, %c0_6, %c0_7] : memref<3x64x128xf32, #tpu.memory_space<vmem>>, vector<1x64x128xf32>
    %10 = vector.shape_cast %9 : vector<1x64x128xf32> to vector<64x128xf32>
    %cst_8 = arith.constant dense<0.000000e+00> : vector<32x128xf32>
    %11 = tpu.matmul %8, %10, %cst_8 {dimension_numbers = #tpu.dot_dimension_numbers<[1], [0], [0], [1], [0, 0, 1, 1], [], []>} : vector<32x64xf32>, vector<64x128xf32>, vector<32x128xf32> -> vector<32x128xf32>
    %12 = arith.addf %7, %11 : vector<32x128xf32>
    %13 = vector.extract_strided_slice %2 {offsets = [0, 2, 0], sizes = [2, 16, 64], strides = [1, 1, 1]} : vector<2x18x64xf32> to vector<2x16x64xf32>
    %14 = vector.shape_cast %13 : vector<2x16x64xf32> to vector<32x64xf32>
    %c2 = arith.constant 2 : index
    %c0_9 = arith.constant 0 : index
    %c0_10 = arith.constant 0 : index
    %15 = vector.load %arg2[%c2, %c0_9, %c0_10] : memref<3x64x128xf32, #tpu.memory_space<vmem>>, vector<1x64x128xf32>
    %16 = vector.shape_cast %15 : vector<1x64x128xf32> to vector<64x128xf32>
    %cst_11 = arith.constant dense<0.000000e+00> : vector<32x128xf32>
    %17 = tpu.matmul %14, %16, %cst_11 {dimension_numbers = #tpu.dot_dimension_numbers<[1], [0], [0], [1], [0, 0, 1, 1], [], []>} : vector<32x64xf32>, vector<64x128xf32>, vector<32x128xf32> -> vector<32x128xf32>
    %18 = arith.addf %12, %17 : vector<32x128xf32>
    %19 = vector.shape_cast %18 : vector<32x128xf32> to vector<2x16x128xf32>
    %c0_12 = arith.constant 0 : index
    %c0_13 = arith.constant 0 : index
    %c0_14 = arith.constant 0 : index
    %20 = vector.load %arg5[%c0_12, %c0_13, %c0_14] : memref<2x16x128xf32, #tpu.memory_space<vmem>>, vector<2x16x128xf32>
    tpu.vector_store %arg5[%c0_12, %c0_13, %c0_14], %19 {strides = array<i32>} : memref<2x16x128xf32, #tpu.memory_space<vmem>>, vector<2x16x128xf32>,
    %cst_15 = arith.constant dense<0.000000e+00> : vector<128xf32>
    %21 = vector.multi_reduction <add>, %18, %cst_15 [0] : vector<32x128xf32> to vector<128xf32>
    %22 = vector.shape_cast %21 : vector<128xf32> to vector<1x128xf32>
    %23 = arith.mulf %18, %18 : vector<32x128xf32>
    %cst_16 = arith.constant dense<0.000000e+00> : vector<128xf32>
    %24 = vector.multi_reduction <add>, %23, %cst_16 [0] : vector<32x128xf32> to vector<128xf32>
    %25 = vector.shape_cast %24 : vector<128xf32> to vector<1x128xf32>
    %26 = tpu.concatenate %22, %25 in 0 : vector<1x128xf32>, vector<1x128xf32> -> vector<2x128xf32>
    %27 = vector.shape_cast %26 : vector<2x128xf32> to vector<1x2x128xf32>
    %c0_17 = arith.constant 0 : index
    %c0_18 = arith.constant 0 : index
    %c0_19 = arith.constant 0 : index
    %28 = vector.load %arg6[%c0_17, %c0_18, %c0_19] : memref<1x2x128xf32, #tpu.memory_space<vmem>>, vector<1x2x128xf32>
    tpu.vector_store %arg6[%c0_17, %c0_18, %c0_19], %27 {strides = array<i32>} : memref<1x2x128xf32, #tpu.memory_space<vmem>>, vector<1x2x128xf32>,
    return
  }
  func.func @transform_0(%arg0: i32) -> (i32, i32, i32) {
    %c0_i32 = arith.constant 0 : i32
    %c0_i32_0 = arith.constant 0 : i32
    %c0_i32_1 = arith.constant 0 : i32
    return %arg0, %c0_i32, %c0_i32_0 : i32, i32, i32
  }
  func.func @transform_1(%arg0: i32) -> (i32, i32, i32) {
    %c0_i32 = arith.constant 0 : i32
    %c0_i32_0 = arith.constant 0 : i32
    %c0_i32_1 = arith.constant 0 : i32
    %c0_i32_2 = arith.constant 0 : i32
    return %c0_i32, %c0_i32_0, %c0_i32_1 : i32, i32, i32
  }
  func.func @transform_2(%arg0: i32) -> (i32, i32) {
    %c0_i32 = arith.constant 0 : i32
    %c0_i32_0 = arith.constant 0 : i32
    %c0_i32_1 = arith.constant 0 : i32
    return %c0_i32, %c0_i32_0 : i32, i32
  }
  func.func @transform_3(%arg0: i32) -> (i32, i32) {
    %c0_i32 = arith.constant 0 : i32
    %c0_i32_0 = arith.constant 0 : i32
    %c0_i32_1 = arith.constant 0 : i32
    return %c0_i32, %c0_i32_0 : i32, i32
  }
  func.func @transform_4(%arg0: i32) -> (i32, i32, i32) {
    %c0_i32 = arith.constant 0 : i32
    %c0_i32_0 = arith.constant 0 : i32
    %c0_i32_1 = arith.constant 0 : i32
    return %arg0, %c0_i32, %c0_i32_0 : i32, i32, i32
  }
  func.func @transform_5(%arg0: i32) -> (i32, i32, i32) {
    %c0_i32 = arith.constant 0 : i32
    %c0_i32_0 = arith.constant 0 : i32
    %c0_i32_1 = arith.constant 0 : i32
    return %arg0, %c0_i32, %c0_i32_0 : i32, i32, i32
  }
}

module attributes {stable_mosaic.version = 11 : i64} {
  func.func @_conv_stats_kernel(%arg0: i32, %arg1: memref<2x16x128xf32, #tpu.memory_space<vmem>>, %arg2: memref<3x128x128xf32, #tpu.memory_space<vmem>>, %arg3: memref<1x128xf32, #tpu.memory_space<vmem>>, %arg4: memref<1x128xf32, #tpu.memory_space<vmem>>, %arg5: memref<2x16x128xf32, #tpu.memory_space<vmem>>, %arg6: memref<1x2x128xf32, #tpu.memory_space<vmem>>) attributes {dimension_semantics = [#tpu.dimension_semantics<parallel>], iteration_bounds = array<i64: 4>, scalar_prefetch = 0 : i64, scratch_operands = 0 : i64, tpu.core_type = #tpu.core_type<tc>, window_params = [{transform_indices = @transform_0, window_bounds = array<i64: 2, 16, 128>}, {pipeline_mode = #tpu.pipeline_mode<synchronous>, transform_indices = @transform_1, window_bounds = array<i64: 3, 128, 128>}, {pipeline_mode = #tpu.pipeline_mode<synchronous>, transform_indices = @transform_2, window_bounds = array<i64: 1, 128>}, {pipeline_mode = #tpu.pipeline_mode<synchronous>, transform_indices = @transform_3, window_bounds = array<i64: 1, 128>}, {transform_indices = @transform_4, window_bounds = array<i64: 2, 16, 128>}, {transform_indices = @transform_5, window_bounds = array<i64: 1, 2, 128>}]} {
    %c0 = arith.constant 0 : index
    %c0_0 = arith.constant 0 : index
    %c0_1 = arith.constant 0 : index
    %0 = vector.load %arg1[%c0, %c0_0, %c0_1] : memref<2x16x128xf32, #tpu.memory_space<vmem>>, vector<2x16x128xf32>
    %c0_2 = arith.constant 0 : index
    %c0_3 = arith.constant 0 : index
    %1 = vector.load %arg3[%c0_2, %c0_3] : memref<1x128xf32, #tpu.memory_space<vmem>>, vector<1x128xf32>
    %2 = vector.shape_cast %1 : vector<1x128xf32> to vector<1x1x128xf32>
    %3 = vector.broadcast %2 : vector<1x1x128xf32> to vector<2x16x128xf32>
    %4 = arith.mulf %0, %3 : vector<2x16x128xf32>
    %c0_4 = arith.constant 0 : index
    %c0_5 = arith.constant 0 : index
    %5 = vector.load %arg4[%c0_4, %c0_5] : memref<1x128xf32, #tpu.memory_space<vmem>>, vector<1x128xf32>
    %6 = vector.shape_cast %5 : vector<1x128xf32> to vector<1x1x128xf32>
    %7 = vector.broadcast %6 : vector<1x1x128xf32> to vector<2x16x128xf32>
    %8 = arith.addf %4, %7 : vector<2x16x128xf32>
    %cst = arith.constant 0.000000e+00 : f32
    %9 = vector.broadcast %cst : f32 to vector<2x16x128xf32>
    %10 = arith.maximumf %8, %9 : vector<2x16x128xf32>
    %cst_6 = arith.constant 0.000000e+00 : f32
    %11 = vector.broadcast %cst_6 : f32 to vector<2x1x128xf32>
    %12 = tpu.concatenate %11, %10, %11 in 1 : vector<2x1x128xf32>, vector<2x16x128xf32>, vector<2x1x128xf32> -> vector<2x18x128xf32>
    %13 = vector.extract_strided_slice %12 {offsets = [0, 0, 0], sizes = [2, 16, 128], strides = [1, 1, 1]} : vector<2x18x128xf32> to vector<2x16x128xf32>
    %14 = vector.shape_cast %13 : vector<2x16x128xf32> to vector<32x128xf32>
    %c0_7 = arith.constant 0 : index
    %c0_8 = arith.constant 0 : index
    %c0_9 = arith.constant 0 : index
    %15 = vector.load %arg2[%c0_7, %c0_8, %c0_9] : memref<3x128x128xf32, #tpu.memory_space<vmem>>, vector<1x128x128xf32>
    %16 = vector.shape_cast %15 : vector<1x128x128xf32> to vector<128x128xf32>
    %cst_10 = arith.constant dense<0.000000e+00> : vector<32x128xf32>
    %17 = tpu.matmul %14, %16, %cst_10 {dimension_numbers = #tpu.dot_dimension_numbers<[1], [0], [0], [1], [0, 0, 1, 1], [], []>} : vector<32x128xf32>, vector<128x128xf32>, vector<32x128xf32> -> vector<32x128xf32>
    %18 = vector.shape_cast %10 : vector<2x16x128xf32> to vector<32x128xf32>
    %c1 = arith.constant 1 : index
    %c0_11 = arith.constant 0 : index
    %c0_12 = arith.constant 0 : index
    %19 = vector.load %arg2[%c1, %c0_11, %c0_12] : memref<3x128x128xf32, #tpu.memory_space<vmem>>, vector<1x128x128xf32>
    %20 = vector.shape_cast %19 : vector<1x128x128xf32> to vector<128x128xf32>
    %cst_13 = arith.constant dense<0.000000e+00> : vector<32x128xf32>
    %21 = tpu.matmul %18, %20, %cst_13 {dimension_numbers = #tpu.dot_dimension_numbers<[1], [0], [0], [1], [0, 0, 1, 1], [], []>} : vector<32x128xf32>, vector<128x128xf32>, vector<32x128xf32> -> vector<32x128xf32>
    %22 = arith.addf %17, %21 : vector<32x128xf32>
    %23 = vector.extract_strided_slice %12 {offsets = [0, 2, 0], sizes = [2, 16, 128], strides = [1, 1, 1]} : vector<2x18x128xf32> to vector<2x16x128xf32>
    %24 = vector.shape_cast %23 : vector<2x16x128xf32> to vector<32x128xf32>
    %c2 = arith.constant 2 : index
    %c0_14 = arith.constant 0 : index
    %c0_15 = arith.constant 0 : index
    %25 = vector.load %arg2[%c2, %c0_14, %c0_15] : memref<3x128x128xf32, #tpu.memory_space<vmem>>, vector<1x128x128xf32>
    %26 = vector.shape_cast %25 : vector<1x128x128xf32> to vector<128x128xf32>
    %cst_16 = arith.constant dense<0.000000e+00> : vector<32x128xf32>
    %27 = tpu.matmul %24, %26, %cst_16 {dimension_numbers = #tpu.dot_dimension_numbers<[1], [0], [0], [1], [0, 0, 1, 1], [], []>} : vector<32x128xf32>, vector<128x128xf32>, vector<32x128xf32> -> vector<32x128xf32>
    %28 = arith.addf %22, %27 : vector<32x128xf32>
    %29 = vector.shape_cast %28 : vector<32x128xf32> to vector<2x16x128xf32>
    %c0_17 = arith.constant 0 : index
    %c0_18 = arith.constant 0 : index
    %c0_19 = arith.constant 0 : index
    %30 = vector.load %arg5[%c0_17, %c0_18, %c0_19] : memref<2x16x128xf32, #tpu.memory_space<vmem>>, vector<2x16x128xf32>
    tpu.vector_store %arg5[%c0_17, %c0_18, %c0_19], %29 {strides = array<i32>} : memref<2x16x128xf32, #tpu.memory_space<vmem>>, vector<2x16x128xf32>,
    %cst_20 = arith.constant dense<0.000000e+00> : vector<128xf32>
    %31 = vector.multi_reduction <add>, %28, %cst_20 [0] : vector<32x128xf32> to vector<128xf32>
    %32 = vector.shape_cast %31 : vector<128xf32> to vector<1x128xf32>
    %33 = arith.mulf %28, %28 : vector<32x128xf32>
    %cst_21 = arith.constant dense<0.000000e+00> : vector<128xf32>
    %34 = vector.multi_reduction <add>, %33, %cst_21 [0] : vector<32x128xf32> to vector<128xf32>
    %35 = vector.shape_cast %34 : vector<128xf32> to vector<1x128xf32>
    %36 = tpu.concatenate %32, %35 in 0 : vector<1x128xf32>, vector<1x128xf32> -> vector<2x128xf32>
    %37 = vector.shape_cast %36 : vector<2x128xf32> to vector<1x2x128xf32>
    %c0_22 = arith.constant 0 : index
    %c0_23 = arith.constant 0 : index
    %c0_24 = arith.constant 0 : index
    %38 = vector.load %arg6[%c0_22, %c0_23, %c0_24] : memref<1x2x128xf32, #tpu.memory_space<vmem>>, vector<1x2x128xf32>
    tpu.vector_store %arg6[%c0_22, %c0_23, %c0_24], %37 {strides = array<i32>} : memref<1x2x128xf32, #tpu.memory_space<vmem>>, vector<1x2x128xf32>,
    return
  }
  func.func @transform_0(%arg0: i32) -> (i32, i32, i32) {
    %c0_i32 = arith.constant 0 : i32
    %c0_i32_0 = arith.constant 0 : i32
    %c0_i32_1 = arith.constant 0 : i32
    return %arg0, %c0_i32, %c0_i32_0 : i32, i32, i32
  }
  func.func @transform_1(%arg0: i32) -> (i32, i32, i32) {
    %c0_i32 = arith.constant 0 : i32
    %c0_i32_0 = arith.constant 0 : i32
    %c0_i32_1 = arith.constant 0 : i32
    %c0_i32_2 = arith.constant 0 : i32
    return %c0_i32, %c0_i32_0, %c0_i32_1 : i32, i32, i32
  }
  func.func @transform_2(%arg0: i32) -> (i32, i32) {
    %c0_i32 = arith.constant 0 : i32
    %c0_i32_0 = arith.constant 0 : i32
    %c0_i32_1 = arith.constant 0 : i32
    return %c0_i32, %c0_i32_0 : i32, i32
  }
  func.func @transform_3(%arg0: i32) -> (i32, i32) {
    %c0_i32 = arith.constant 0 : i32
    %c0_i32_0 = arith.constant 0 : i32
    %c0_i32_1 = arith.constant 0 : i32
    return %c0_i32, %c0_i32_0 : i32, i32
  }
  func.func @transform_4(%arg0: i32) -> (i32, i32, i32) {
    %c0_i32 = arith.constant 0 : i32
    %c0_i32_0 = arith.constant 0 : i32
    %c0_i32_1 = arith.constant 0 : i32
    return %arg0, %c0_i32, %c0_i32_0 : i32, i32, i32
  }
  func.func @transform_5(%arg0: i32) -> (i32, i32, i32) {
    %c0_i32 = arith.constant 0 : i32
    %c0_i32_0 = arith.constant 0 : i32
    %c0_i32_1 = arith.constant 0 : i32
    return %arg0, %c0_i32, %c0_i32_0 : i32, i32, i32
  }
}

module attributes {stable_mosaic.version = 11 : i64} {
  func.func @_bn_relu_kernel(%arg0: i32, %arg1: memref<2x16x128xf32, #tpu.memory_space<vmem>>, %arg2: memref<1x128xf32, #tpu.memory_space<vmem>>, %arg3: memref<1x128xf32, #tpu.memory_space<vmem>>, %arg4: memref<2x16x128xf32, #tpu.memory_space<vmem>>) attributes {dimension_semantics = [#tpu.dimension_semantics<parallel>], iteration_bounds = array<i64: 4>, scalar_prefetch = 0 : i64, scratch_operands = 0 : i64, tpu.core_type = #tpu.core_type<tc>, window_params = [{transform_indices = @transform_0, window_bounds = array<i64: 2, 16, 128>}, {pipeline_mode = #tpu.pipeline_mode<synchronous>, transform_indices = @transform_1, window_bounds = array<i64: 1, 128>}, {pipeline_mode = #tpu.pipeline_mode<synchronous>, transform_indices = @transform_2, window_bounds = array<i64: 1, 128>}, {transform_indices = @transform_3, window_bounds = array<i64: 2, 16, 128>}]} {
    %c0 = arith.constant 0 : index
    %c0_0 = arith.constant 0 : index
    %c0_1 = arith.constant 0 : index
    %0 = vector.load %arg1[%c0, %c0_0, %c0_1] : memref<2x16x128xf32, #tpu.memory_space<vmem>>, vector<2x16x128xf32>
    %c0_2 = arith.constant 0 : index
    %c0_3 = arith.constant 0 : index
    %1 = vector.load %arg2[%c0_2, %c0_3] : memref<1x128xf32, #tpu.memory_space<vmem>>, vector<1x128xf32>
    %2 = vector.shape_cast %1 : vector<1x128xf32> to vector<1x1x128xf32>
    %3 = vector.broadcast %2 : vector<1x1x128xf32> to vector<2x16x128xf32>
    %4 = arith.mulf %0, %3 : vector<2x16x128xf32>
    %c0_4 = arith.constant 0 : index
    %c0_5 = arith.constant 0 : index
    %5 = vector.load %arg3[%c0_4, %c0_5] : memref<1x128xf32, #tpu.memory_space<vmem>>, vector<1x128xf32>
    %6 = vector.shape_cast %5 : vector<1x128xf32> to vector<1x1x128xf32>
    %7 = vector.broadcast %6 : vector<1x1x128xf32> to vector<2x16x128xf32>
    %8 = arith.addf %4, %7 : vector<2x16x128xf32>
    %cst = arith.constant 0.000000e+00 : f32
    %9 = vector.broadcast %cst : f32 to vector<2x16x128xf32>
    %10 = arith.maximumf %8, %9 : vector<2x16x128xf32>
    %c0_6 = arith.constant 0 : index
    %c0_7 = arith.constant 0 : index
    %c0_8 = arith.constant 0 : index
    %11 = vector.load %arg4[%c0_6, %c0_7, %c0_8] : memref<2x16x128xf32, #tpu.memory_space<vmem>>, vector<2x16x128xf32>
    tpu.vector_store %arg4[%c0_6, %c0_7, %c0_8], %10 {strides = array<i32>} : memref<2x16x128xf32, #tpu.memory_space<vmem>>, vector<2x16x128xf32>,
    return
  }
  func.func @transform_0(%arg0: i32) -> (i32, i32, i32) {
    %c0_i32 = arith.constant 0 : i32
    %c0_i32_0 = arith.constant 0 : i32
    %c0_i32_1 = arith.constant 0 : i32
    return %arg0, %c0_i32, %c0_i32_0 : i32, i32, i32
  }
  func.func @transform_1(%arg0: i32) -> (i32, i32) {
    %c0_i32 = arith.constant 0 : i32
    %c0_i32_0 = arith.constant 0 : i32
    %c0_i32_1 = arith.constant 0 : i32
    return %c0_i32, %c0_i32_0 : i32, i32
  }
  func.func @transform_2(%arg0: i32) -> (i32, i32) {
    %c0_i32 = arith.constant 0 : i32
    %c0_i32_0 = arith.constant 0 : i32
    %c0_i32_1 = arith.constant 0 : i32
    return %c0_i32, %c0_i32_0 : i32, i32
  }
  func.func @transform_3(%arg0: i32) -> (i32, i32, i32) {
    %c0_i32 = arith.constant 0 : i32
    %c0_i32_0 = arith.constant 0 : i32
    %c0_i32_1 = arith.constant 0 : i32
    return %arg0, %c0_i32, %c0_i32_0 : i32, i32, i32
  }
}

</mosaic_0001>

<bundles_post_ra>
// kernel: tile.28
= control target key start
LH: loop header
LB: loop body
LE: loop exit
PB: predicated region body
PF: predicated region fallthrough
CT: control target
= control target key end

     0   :  { %s28_s0 = inlined_call_operand.vmem [shape: f32[8], index: 0, kind: input, shape index: {}]   ;;  %s29_s1 = inlined_call_operand.vmem [shape: f32[16,8], index: 1, kind: output, shape index: {}]  }
   0x1   :  { %v4_v0 = vld [vmem:[%s28_s0] ss:$0 sm:$0xff] }
   0x2   :  { %5 = vst [vmem:[%s29_s1] sm:$0xff] %v4_v0  ;;  %8 = vst [vmem:[%s29_s1 + $0x8] sm:$0xff] %v4_v0 }

// kernel: tile.29
= control target key start
LH: loop header
LB: loop body
LE: loop exit
PB: predicated region body
PF: predicated region fallthrough
CT: control target
= control target key end

     0   :  { %s131_s10 = smov 120   ;;  %s132_s11 = smov 104   ;;  %vm3_vm0 = vcmask 64512   ;;  %vm9_vm1 = vcmask 1048512   ;;  %vm15_vm2 = vcmask 982912   ;;  %vm21_vm3 = vcmask 917312   ;;  %s207_s0 = inlined_call_operand.vmem [shape: f32[16,8], index: 0, kind: input, shape index: {}]   ;;  %s208_s1 = inlined_call_operand.vmem [shape: f32[1,128], index: 1, kind: output, shape index: {}]  }
   0x1   :  { %v101_v0 = vld [vmem:[%s207_s0 + $0xf] sm:$0x1]   ;;  %v103_v1 = vld [vmem:[%s207_s0 + $0xd] sm:$0x1]   ;;  %v102_v2 = vld [vmem:[%s207_s0 + $0xe] sm:$0x1]  }
   0x2   :  { %7 = vrot.lane.b32.xlu0 %v101_v0, %s131_s10  ;;  %19 = vrot.lane.b32.xlu1 %v103_v1, %s132_s11  ;;  %v104_v3 = vld [vmem:[%s207_s0 + $0xc] sm:$0x1]   ;;  %s133_s16 = smov 112   ;;  %s134_s17 = smov 96   ;;  %v105_v4 = vld [vmem:[%s207_s0 + $0xb] sm:$0x1]  }
   0x3   :  { %v106_v5 = vld [vmem:[%s207_s0 + $0xa] sm:$0x1]   ;;  %v2_v6 = vld [vmem:[%s207_s0] sm:$0x1]   ;;  %s135_s24 = smov 88   ;;  %s136_s25 = smov 80  }
   0x4   :  { %4 = vst.msk [vmem:[#allocation0] sm:$0x1] %vm3_vm0, %v2_v6   ;;  %v107_v7 = vld [vmem:[%s207_s0 + $0x9] sm:$0x1]   ;;  %v108_v8 = vld [vmem:[%s207_s0 + $0x8] sm:$0x1]  }
   0x5   :  { %s137_s30 = smov 72   ;;  %s138_s2 = smov 64   ;;  %v109_v9 = vld [vmem:[%s207_s0 + $0x7] sm:$0x1]   ;;  %v110_v10 = vld [vmem:[%s207_s0 + $0x6] sm:$0x1]  }
   0x6   :  { %13 = vrot.lane.b32.xlu0 %v102_v2, %s133_s16  ;;  %25 = vrot.lane.b32.xlu1 %v104_v3, %s134_s17  ;;  %s139_s7 = smov 56   ;;  %s140_s8 = smov 48   ;;  %v111_v11 = vld [vmem:[%s207_s0 + $0x5] sm:$0x1]   ;;  %v112_v12 = vld [vmem:[%s207_s0 + $0x4] sm:$0x1]  }
   0x7   :  { %s141_s13 = smov 40   ;;  %s142_s14 = smov 32   ;;  %v113_v13 = vld [vmem:[%s207_s0 + $0x3] sm:$0x1]   ;;  %v114_v14 = vld [vmem:[%s207_s0 + $0x2] sm:$0x1]  }
   0x8   :  { %s143_s19 = smov 24   ;;  %s144_s20 = smov 16   ;;  %v115_v15 = vld [vmem:[%s207_s0 + $0x1] sm:$0x1]   ;;  %vm27_vm4 = vcmask 851712   ;;  %vm33_vm5 = vcmask 786112  }
   0x9   :  { %s145_s0 = smov 8   ;;  %vm39_vm6 = vcmask 720512   ;;  %vm45_vm7 = vcmask 654912   ;;  %vm51_vm8 = vcmask 589312   ;;  %vm57_vm9 = vcmask 523712  }
   0xa   :  { %31 = vrot.lane.b32.xlu0 %v105_v4, %s135_s24  ;;  %37 = vrot.lane.b32.xlu1 %v106_v5, %s136_s25  ;;  %vm63_vm10 = vcmask 458112   ;;  %vm69_vm11 = vcmask 392512   ;;  %vm75_vm12 = vcmask 326912   ;;  %vm81_vm13 = vcmask 261312  }
   0xb   :  { %vm87_vm14 = vcmask 195712   ;;  %vm93_vm15 = vcmask 130112  }
   0xe   :  { %43 = vrot.lane.b32.xlu0 %v107_v7, %s137_s30  ;;  %49 = vrot.lane.b32.xlu1 %v108_v8, %s138_s2 }
  0x12   :  { %55 = vrot.lane.b32.xlu0 %v109_v9, %s139_s7  ;;  %61 = vrot.lane.b32.xlu1 %v110_v10, %s140_s8 }
  0x16   :  { %67 = vrot.lane.b32.xlu0 %v111_v11, %s141_s13  ;;  %73 = vrot.lane.b32.xlu1 %v112_v12, %s142_s14 }
  0x1a   :  { %79 = vrot.lane.b32.xlu0 %v113_v13, %s143_s19  ;;  %85 = vrot.lane.b32.xlu1 %v114_v14, %s144_s20 }
  0x1e   :  { %91 = vrot.lane.b32.xlu0 %v115_v15, %s145_s0 }
  0x74   :  { %v8_v16 = vpop.permute.xlu0 %7   ;;  %v20_v17 = vpop.permute.xlu1 %19  }
  0x75   :  { %10 = vst.msk [vmem:[#allocation0] sm:$0x1] %vm9_vm1, %v8_v16  }
  0x78   :  { %v14_v18 = vpop.permute.xlu0 %13   ;;  %v26_v19 = vpop.permute.xlu1 %25  }
  0x79   :  { %16 = vst.msk [vmem:[#allocation0] sm:$0x1] %vm15_vm2, %v14_v18  }
  0x7a   :  { %22 = vst.msk [vmem:[#allocation0] sm:$0x1] %vm21_vm3, %v20_v17  }
  0x7b   :  { %28 = vst.msk [vmem:[#allocation0] sm:$0x1] %vm27_vm4, %v26_v19  }
  0x7c   :  { %v32_v20 = vpop.permute.xlu0 %31   ;;  %v38_v21 = vpop.permute.xlu1 %37  }
  0x7d   :  { %34 = vst.msk [vmem:[#allocation0] sm:$0x1] %vm33_vm5, %v32_v20  }
  0x7e   :  { %40 = vst.msk [vmem:[#allocation0] sm:$0x1] %vm39_vm6, %v38_v21  }
  0x80   :  { %v44_v22 = vpop.permute.xlu0 %43   ;;  %v50_v23 = vpop.permute.xlu1 %49  }
  0x81   :  { %46 = vst.msk [vmem:[#allocation0] sm:$0x1] %vm45_vm7, %v44_v22  }
  0x82   :  { %52 = vst.msk [vmem:[#allocation0] sm:$0x1] %vm51_vm8, %v50_v23  }
  0x84   :  { %v56_v24 = vpop.permute.xlu0 %55   ;;  %v62_v25 = vpop.permute.xlu1 %61  }
  0x85   :  { %58 = vst.msk [vmem:[#allocation0] sm:$0x1] %vm57_vm9, %v56_v24  }
  0x86   :  { %64 = vst.msk [vmem:[#allocation0] sm:$0x1] %vm63_vm10, %v62_v25  }
  0x88   :  { %v68_v26 = vpop.permute.xlu0 %67   ;;  %v74_v27 = vpop.permute.xlu1 %73  }
  0x89   :  { %70 = vst.msk [vmem:[#allocation0] sm:$0x1] %vm69_vm11, %v68_v26  }
  0x8a   :  { %76 = vst.msk [vmem:[#allocation0] sm:$0x1] %vm75_vm12, %v74_v27  }
  0x8c   :  { %v80_v28 = vpop.permute.xlu0 %79   ;;  %v86_v29 = vpop.permute.xlu1 %85  }
  0x8d   :  { %82 = vst.msk [vmem:[#allocation0] sm:$0x1] %vm81_vm13, %v80_v28  }
  0x8e   :  { %88 = vst.msk [vmem:[#allocation0] sm:$0x1] %vm87_vm14, %v86_v29  }
  0x90   :  { %v92_v30 = vpop.permute.xlu0 %91  }
  0x91   :  { %94 = vst.msk [vmem:[#allocation0] sm:$0x1] %vm93_vm15, %v92_v30  }
  0x98   :  { %v98_v31 = vld [vmem:[#allocation0] sm:$0x1] }
  0x99   :  { %100 = vst [vmem:[%s208_s1] sm:$0x1] %v98_v31 }

// kernel: double_conv_floor_3d.3
= control target key start
LH: loop header
LB: loop body
LE: loop exit
PB: predicated region body
PF: predicated region fallthrough
CT: control target
= control target key end

     0   :  { %s965_s18 = smov 0   ;;  %s1092_s0 = inlined_call_operand.vmem [shape: f32[8,16,64], index: 0, kind: input, shape index: {}]   ;;  %s1093_s1 = inlined_call_operand.vmem [shape: f32[3,64,128], index: 1, kind: input, shape index: {}]   ;;  %s1094_s2 = inlined_call_operand.vmem [shape: f32[1,64], index: 2, kind: input, shape index: {}]   ;;  %s1095_s3 = inlined_call_operand.vmem [shape: f32[1,64], index: 3, kind: input, shape index: {}]   ;;  %s1096_s4 = inlined_call_operand.vmem [shape: f32[8,16,128], index: 4, kind: output, shape index: {0}]   ;;  %s1097_s5 = inlined_call_operand.vmem [shape: f32[4,2,128], index: 5, kind: output, shape index: {1}]  }
   0x1 LB: > { %s971_s2 = sadd.s32 4294967295, %s933_s18   ;;  %p713_p0 = scmp.ge.s32.totalorder %s933_s18, 1  ;;  %s933_s18 = sphi %s965_s18, %s16_s18  }
   0x2   : > { %p192_p1 = scmp.lt.s32.totalorder %s933_s18, 5 }
   0x4   : > { %p193_p2 = pnand %p713_p0, %p192_p1 }
   0x5   : > { %v721_v0 = vld [vmem:[%s1093_s1 + $0x40] sm:$0xff] (!%p193_p2)  ;;  %v722_v1 = vld [vmem:[%s1093_s1 + $0x48] sm:$0xff] (!%p193_p2)  ;;  %s714_s24 = sshll.u32 (!%p193_p2), %s971_s2, 1  ;;  %v723_v5 = vld [vmem:[%s1093_s1 + $0x50] sm:$0xff] (!%p193_p2)  ;;  %vm284_vm0 = vcmask (!%p193_p2), 523264   ;;  %vm252_vm1 = vcmask (!%p193_p2), 1040384  }
   0x6   : > { %196 = sbr.rel (%p193_p2) target bundleno = 278 (0x116), region = 36  ;;  %v267_v2 = vld [vmem:[%s1093_s1] sm:$0xff] (!%p193_p2)  ;;  %v855_v3 = vpack.c.bf16 (!%p193_p2), %v722_v1, %v721_v0  ;;  %v268_v4 = vld [vmem:[%s1093_s1 + $0x8] sm:$0xff] (!%p193_p2)  ;;  %v724_v6 = vld [vmem:[%s1093_s1 + $0x58] sm:$0xff] (!%p193_p2)  ;;  %p227_p3 = scmp.lt.s32.totalorder (!%p193_p2), %s714_s24, 7  ;;  %vm475_vm2 = vcmask (!%p193_p2), 1045504  }
   0x7   : > { %v871_v7 = vpack.c.bf16 (!%p193_p2), %v268_v4, %v267_v2  ;;  %v859_v8 = vpack.c.bf16 (!%p193_p2), %v724_v6, %v723_v5  ;;  %v269_v9 = vld [vmem:[%s1093_s1 + $0x10] sm:$0xff] (!%p193_p2)  ;;  %v270_v10 = vld [vmem:[%s1093_s1 + $0x18] sm:$0xff] (!%p193_p2)  ;;  %v725_v11 = vld [vmem:[%s1093_s1 + $0x60] sm:$0xff] (!%p193_p2)  ;;  %p240_p4 = scmp.lt.s32.totalorder (!%p193_p2), %s971_s2, 3 }
   0x8   : > { %856 = vmatprep.subr.bf16.mxu1 (!%p193_p2), %v855_v3  ;;  %v875_v12 = vpack.c.bf16 (!%p193_p2), %v270_v10, %v269_v9  ;;  %v726_v13 = vld [vmem:[%s1093_s1 + $0x68] sm:$0xff] (!%p193_p2)  ;;  %v271_v14 = vld [vmem:[%s1093_s1 + $0x20] sm:$0xff] (!%p193_p2)  ;;  %v727_v18 = vld [vmem:[%s1093_s1 + $0x70] sm:$0xff] (!%p193_p2) }
   0x9   : > { %v272_v15 = vld [vmem:[%s1093_s1 + $0x28] sm:$0xff] (!%p193_p2)  ;;  %872 = vmatprep.subr.bf16.mxu0 (!%p193_p2), %v871_v7  ;;  %858 = vmatpush3.bf16.msra.mxu1 (!%p193_p2), %v855_v3  ;;  %v863_v16 = vpack.c.bf16 (!%p193_p2), %v726_v13, %v725_v11  ;;  %v728_v19 = vld [vmem:[%s1093_s1 + $0x78] sm:$0xff] (!%p193_p2)  ;;  %v273_v20 = vld [vmem:[%s1093_s1 + $0x30] sm:$0xff] (!%p193_p2) }
   0xa   : > { %874 = vmatpush3.bf16.msra.mxu0 (!%p193_p2), %v871_v7  ;;  %860 = vmatprep.subr.bf16.mxu1 (!%p193_p2), %v859_v8  ;;  %v879_v17 = vpack.c.bf16 (!%p193_p2), %v272_v15, %v271_v14  ;;  %v274_v21 = vld [vmem:[%s1093_s1 + $0x38] sm:$0xff] (!%p193_p2)  ;;  %v867_v24 = vpack.c.bf16 (!%p193_p2), %v728_v19, %v727_v18  ;;  %v737_v25 = vld [vmem:[%s1093_s1 + $0x80] sm:$0xff] (!%p193_p2)  ;;  %v738_v26 = vld [vmem:[%s1093_s1 + $0x88] sm:$0xff] (!%p193_p2) }
   0xb   : > { %876 = vmatprep.subr.bf16.mxu0 (!%p193_p2), %v875_v12  ;;  %v883_v27 = vpack.c.bf16 (!%p193_p2), %v274_v21, %v273_v20  ;;  %v887_v32 = vpack.c.bf16 (!%p193_p2), %v738_v26, %v737_v25  ;;  %v739_v36 = vld [vmem:[%s1093_s1 + $0x90] sm:$0xff] (!%p193_p2)  ;;  %v740_v37 = vld [vmem:[%s1093_s1 + $0x98] sm:$0xff] (!%p193_p2)  ;;  %v741_v41 = vld [vmem:[%s1093_s1 + $0xa0] sm:$0xff] (!%p193_p2) }
   0xc   : > { %v891_v39 = vpack.c.bf16 (!%p193_p2), %v740_v37, %v739_v36  ;;  %v742_v42 = vld [vmem:[%s1093_s1 + $0xa8] sm:$0xff] (!%p193_p2)  ;;  %v743_v49 = vld [vmem:[%s1093_s1 + $0xb0] sm:$0xff] (!%p193_p2)  ;;  %v744_v50 = vld [vmem:[%s1093_s1 + $0xb8] sm:$0xff] (!%p193_p2) }
   0xd   : > { %s1099_s24 = smov (!%p227_p3, %s714_s24), 7  ;;  %862 = vmatpush3.bf16.msra.mxu1 %v859_v8  ;;  %v895_v48 = vpack.c.bf16 %v742_v42, %v741_v41  ;;  %v899_v54 = vpack.c.bf16 %v744_v50, %v743_v49  ;;  %s1101_s2 = smov (!%p240_p4, %s971_s2), 3 }
   0xe   : > { %s751_s3 = sshll.u32 %s1099_s24, 4  ;;  %878 = vmatpush3.bf16.msra.mxu0 %v875_v12  ;;  %864 = vmatprep.subr.bf16.mxu1 %v863_v16  ;;  %s720_s24 = sshll.u32 %s1101_s2, 1 }
   0xf   : > { %s231_s26 = scalar_lea.vmem %s1092_s0, %s751_s3  ;;  %880 = vmatprep.subr.bf16.mxu0 %v879_v17  ;;  %s243_s28 = scalar_lea.vmem %s1097_s5, %s720_s24 }
  0x10   : > { %v244_v22 = vld [vmem:[%s231_s26] sm:$0xff]  ;;  %v245_v29 = vld [vmem:[%s231_s26 + $0x8] sm:$0xff]  ;;  %v246_v30 = vld [vmem:[%s231_s26 + $0x10] sm:$0xff] }
  0x11   : > { %v253_v23 = vrot.slane %v244_v22, 7  ;;  %805 = vmatprep.mubr.msk.f32.mxu1 %vm284_vm0, %v244_v22  ;;  %v247_v31 = vld [vmem:[%s231_s26 + $0x18] sm:$0xff]  ;;  %866 = vmatpush3.bf16.msra.mxu1 %v863_v16  ;;  %v254_v33 = vrot.slane %v245_v29, 7  ;;  %v256_v34 = vrot.slane %v246_v30, 7  ;;  %s238_s26 = scalar_lea.vmem %s1096_s4, %s751_s3 }
  0x12   : > { %882 = vmatpush3.bf16.msra.mxu0 %v879_v17  ;;  %868 = vmatprep.subr.bf16.mxu1 %v867_v24  ;;  %v257_v35 = vrot.slane %v247_v31, 7 }
  0x13   : > { %v263_v28 = vsel %vm252_vm1, 0.0, %v253_v23  ;;  %884 = vmatprep.subr.bf16.mxu0 %v883_v27  ;;  %v255_v38 = vsel %vm252_vm1, %v253_v23, %v254_v33  ;;  %v264_v45 = vsel %vm252_vm1, 0.0, %v256_v34  ;;  %v265_v55 = vsel %vm252_vm1, %v254_v33, 0.0 }
  0x14   : > { %827 = vmatprep.mubr.msk.f32.mxu0 %vm284_vm0, %v263_v28  ;;  %v258_v40 = vsel %vm252_vm1, %v256_v34, %v257_v35  ;;  %v476_v43 = vrot.slane %v263_v28, 2  ;;  %v477_v44 = vrot.slane %v255_v38, 2  ;;  %v481_v46 = vrot.slane %v264_v45, 2 }
  0x15   : > { %870 = vmatpush3.bf16.msra.mxu1 %v867_v24  ;;  %v482_v47 = vrot.slane %v258_v40, 2  ;;  %v266_v53 = vsel %vm252_vm1, %v257_v35, 0.0  ;;  %v479_v57 = vrot.slane %v265_v55, 2 }
  0x16   : > { %886 = vmatpush3.bf16.msra.mxu0 %v883_v27  ;;  %903 = vmatprep.subr.bf16.mxu1 %v887_v32  ;;  %v478_v51 = vsel %vm475_vm2, %v476_v43, %v477_v44  ;;  %v484_v56 = vrot.slane %v266_v53, 2 }
  0x17   : > { %888 = vmatprep.subr.bf16.mxu0 %v887_v32  ;;  %v483_v52 = vsel %vm475_vm2, %v481_v46, %v482_v47  ;;  %v480_v59 = vsel %vm475_vm2, %v477_v44, %v479_v57 }
  0x18   : > { %806 = vmatmul.mubr.msk.f32.vlgmr.msra.gmra.mrb[0].mxu1 %vm284_vm0, %v245_v29  ;;  %v485_v58 = vsel %vm475_vm2, %v482_v47, %v484_v56 }
  0x19   : > { %828 = vmatmul.mubr.msk.f32.vlgmr.msra.gmra.mrb[0].mxu0 %vm284_vm0, %v255_v38  ;;  %907 = vmatpush3.bf16.msra.mxu1 %v887_v32 }
  0x1a   : > { %890 = vmatpush3.bf16.msra.mxu0 %v887_v32  ;;  %904 = vmatprep.subr.bf16.mxu1 %v891_v39 }
  0x1b   : > { %892 = vmatprep.subr.bf16.mxu0 %v891_v39  ;;  %808 = vmatprep.mubr.msk.f32.mxu1 %vm284_vm0, %v246_v30 }
  0x1c   : > { %830 = vmatprep.mubr.msk.f32.mxu0 %vm284_vm0, %v264_v45  ;;  %809 = vmatmul.mubr.msk.f32.gmra.mrb[2].mxu1 %vm284_vm0, %v247_v31 }
  0x1d   : > { %908 = vmatpush3.bf16.msra.mxu1 %v891_v39  ;;  %831 = vmatmul.mubr.msk.f32.gmra.mrb[2].mxu0 %vm284_vm0, %v258_v40 }
  0x1e   : > { %894 = vmatpush3.bf16.msra.mxu0 %v891_v39  ;;  %905 = vmatprep.subr.bf16.mxu1 %v895_v48 }
  0x1f   : > { %896 = vmatprep.subr.bf16.mxu0 %v895_v48  ;;  %849 = vmatprep.mubr.msk.f32.mxu0 %vm284_vm0, %v478_v51 }
  0x20   : > { %852 = vmatprep.mubr.msk.f32.mxu1 %vm284_vm0, %v483_v52 }
  0x21   : > { %909 = vmatpush3.bf16.msra.mxu1 %v895_v48 }
  0x22   : > { %898 = vmatpush3.bf16.msra.mxu0 %v895_v48  ;;  %906 = vmatprep.subr.bf16.mxu1 %v899_v54 }
  0x23   : > { %900 = vmatprep.subr.bf16.mxu0 %v899_v54 }
  0x25   : > { %910 = vmatpush3.bf16.msra.mxu1 %v899_v54 }
  0x26   : > { %902 = vmatpush3.bf16.msra.mxu0 %v899_v54 }
  0x28   : > { %853 = vmatmul.mubr.msk.f32.vlgmr.msra.gmra.mrb[4].mxu1 %vm284_vm0, %v485_v58 }
  0x29   : > { %850 = vmatmul.mubr.msk.f32.vlgmr.msra.gmra.mrb[0].mxu0 %vm284_vm0, %v480_v59 }
  0xeb   : > { %v807_v60 = vpop.f32.mrb[0].mxu1 }
  0xec   : > { %v359_v61 = vpop.f32.mrb[1].mxu1 }
  0xef   : > { %v810_v62 = vpop.f32.mrb[2].mxu1 }
  0xf0   : > { %v832_v63 = vpop.f32.mrb[2].mxu0  ;;  %v369_v0 = vpop.f32.mrb[3].mxu1 }
  0xf1   : > { %v470_v1 = vadd.f32 %v832_v63, %v810_v62  ;;  %v464_v2 = vpop.f32.mrb[3].mxu0 }
  0xf2   : > { %v465_v3 = vadd.f32 %v464_v2, %v369_v0 }
  0xfb   : > { %v854_v4 = vpop.f32.mrb[4].mxu1 }
  0xfc   : > { %v851_v5 = vpop.f32.mrb[0].mxu0  ;;  %v591_v6 = vadd.f32 %v854_v4, %v470_v1  ;;  %v579_v7 = vpop.f32.mrb[5].mxu1 }
  0xfd   : > { %v911_v8 = vadd.f32 %v851_v5, %v807_v60  ;;  %v569_v9 = vpop.f32.mrb[1].mxu0  ;;  %v590_v10 = vadd.f32 %v579_v7, %v465_v3 }
  0xfe   : > { %v912_v11 = vadd.f32 %v569_v9, %v359_v61  ;;  %595 = vst [vmem:[%s238_s26 + $0x18] sm:$0xff] %v591_v6  ;;  %v608_v18 = vmul.f32 %v591_v6, %v591_v6 }
  0xff   : > { %593 = vst [vmem:[%s238_s26 + $0x8] sm:$0xff] %v911_v8  ;;  %v606_v12 = vmul.f32 %v911_v8, %v911_v8  ;;  %594 = vst [vmem:[%s238_s26 + $0x10] sm:$0xff] %v590_v10  ;;  %v607_v17 = vmul.f32 %v590_v10, %v590_v10 }
 0x100   : > { %592 = vst [vmem:[%s238_s26] sm:$0xff] %v912_v11  ;;  %v596_v13 = vadd.f32 %v912_v11, %v911_v8  ;;  %v605_v14 = vmul.f32 %v912_v11, %v912_v11 }
 0x102   : > { %v609_v15 = vadd.f32 %v606_v12, %v605_v14  ;;  %v597_v16 = vadd.f32 %v596_v13, %v590_v10 }
 0x104   : > { %v598_v19 = vadd.f32 %v597_v16, %v591_v6  ;;  %v610_v20 = vadd.f32 %v609_v15, %v607_v17 }
 0x106   : > { %v599_v21 = vrot.slane %v598_v19, 4  ;;  %v611_v22 = vadd.f32 %v610_v20, %v608_v18 }
 0x108   : > { %v600_v23 = vadd.f32 %v599_v21, %v598_v19  ;;  %v612_v24 = vrot.slane %v611_v22, 4 }
 0x10a   : > { %v601_v25 = vrot.slane %v600_v23, 2  ;;  %v613_v26 = vadd.f32 %v612_v24, %v611_v22 }
 0x10c   : > { %v602_v27 = vadd.f32 %v601_v25, %v600_v23  ;;  %v614_v28 = vrot.slane %v613_v26, 2 }
 0x10e   : > { %v603_v29 = vrot.slane %v602_v27, 1  ;;  %v615_v30 = vadd.f32 %v614_v28, %v613_v26 }
 0x110   : > { %v616_v31 = vrot.slane %v615_v30, 1  ;;  %v604_v32 = vadd.f32 %v603_v29, %v602_v27 }
 0x112   : > { %v617_v33 = vadd.f32 %v616_v31, %v615_v30 }
 0x114   : > { %v618_v34 = vsel %vm252_vm1, %v604_v32, %v617_v33 }
 0x115   : > { %619 = vst [vmem:[%s243_s28] sm:$0x3] %v618_v34 }
 0x116 PF: > { %s16_s18 = sadd.s32 1, %s933_s18  }
 0x117   : > { %p13_p5 = scmp.ge.s32.totalorder %s16_s18, 6  }
 0x119   :  { %15 = sbr.rel (!%p13_p5) target bundleno = 1 (0x1), region = 80 }

// kernel: double_conv_floor_3d.4
= control target key start
LH: loop header
LB: loop body
LE: loop exit
PB: predicated region body
PF: predicated region fallthrough
CT: control target
= control target key end

     0   :  { %s1134_s18 = smov 0   ;;  %s1362_s0 = inlined_call_operand.vmem [shape: f32[8,16,128], index: 0, kind: input, shape index: {}, may-alias: {0,4}]   ;;  %s1363_s1 = inlined_call_operand.vmem [shape: f32[3,128,128], index: 1, kind: input, shape index: {}]   ;;  %s1364_s2 = inlined_call_operand.vmem [shape: f32[1,128], index: 2, kind: input, shape index: {}]   ;;  %s1365_s3 = inlined_call_operand.vmem [shape: f32[1,128], index: 3, kind: input, shape index: {}]   ;;  %s1366_s4 = inlined_call_operand.vmem [shape: f32[8,16,128], index: 4, kind: output, shape index: {0}, may-alias: {0,4}]   ;;  %s1367_s5 = inlined_call_operand.vmem [shape: f32[4,2,128], index: 5, kind: output, shape index: {1}]  }
   0x1 LB: > { %s1140_s19 = sadd.s32 4294967295, %s1102_s18   ;;  %p744_p0 = scmp.ge.s32.totalorder %s1102_s18, 1  ;;  %s1102_s18 = sphi %s1134_s18, %s16_s18  }
   0x2   : > { %p192_p1 = scmp.lt.s32.totalorder %s1102_s18, 5 }
   0x4   : > { %p193_p2 = pnand %p744_p0, %p192_p1 }
   0x5   : > { %v754_v0 = vld [vmem:[%s1363_s1 + $0x80] sm:$0xff] (!%p193_p2)  ;;  %v755_v1 = vld [vmem:[%s1363_s1 + $0x88] sm:$0xff] (!%p193_p2)  ;;  %s745_s26 = sshll.u32 (!%p193_p2), %s1140_s19, 1  ;;  %v756_v5 = vld [vmem:[%s1363_s1 + $0x90] sm:$0xff] (!%p193_p2)  ;;  %vm278_vm0 = vcmask (!%p193_p2), 1040384   ;;  %vm502_vm2 = vcmask (!%p193_p2), 1045504  }
   0x6   : > { %196 = sbr.rel (%p193_p2) target bundleno = 310 (0x136), region = 36  ;;  %v295_v2 = vld [vmem:[%s1363_s1] sm:$0xff] (!%p193_p2)  ;;  %v968_v3 = vpack.c.bf16 (!%p193_p2), %v755_v1, %v754_v0  ;;  %v296_v4 = vld [vmem:[%s1363_s1 + $0x8] sm:$0xff] (!%p193_p2)  ;;  %v757_v6 = vld [vmem:[%s1363_s1 + $0x98] sm:$0xff] (!%p193_p2)  ;;  %p227_p3 = scmp.lt.s32.totalorder (!%p193_p2), %s745_s26, 7 }
   0x7   : > { %v1000_v7 = vpack.c.bf16 (!%p193_p2), %v296_v4, %v295_v2  ;;  %v972_v8 = vpack.c.bf16 (!%p193_p2), %v757_v6, %v756_v5  ;;  %v297_v9 = vld [vmem:[%s1363_s1 + $0x10] sm:$0xff] (!%p193_p2)  ;;  %v298_v10 = vld [vmem:[%s1363_s1 + $0x18] sm:$0xff] (!%p193_p2)  ;;  %v758_v11 = vld [vmem:[%s1363_s1 + $0xa0] sm:$0xff] (!%p193_p2)  ;;  %p240_p4 = scmp.lt.s32.totalorder (!%p193_p2), %s1140_s19, 3 }
   0x8   : > { %969 = vmatprep.subr.bf16.mxu1 (!%p193_p2), %v968_v3  ;;  %v1004_v12 = vpack.c.bf16 (!%p193_p2), %v298_v10, %v297_v9  ;;  %v759_v13 = vld [vmem:[%s1363_s1 + $0xa8] sm:$0xff] (!%p193_p2)  ;;  %v299_v14 = vld [vmem:[%s1363_s1 + $0x20] sm:$0xff] (!%p193_p2)  ;;  %v760_v18 = vld [vmem:[%s1363_s1 + $0xb0] sm:$0xff] (!%p193_p2) }
   0x9   : > { %v300_v15 = vld [vmem:[%s1363_s1 + $0x28] sm:$0xff] (!%p193_p2)  ;;  %1001 = vmatprep.subr.bf16.mxu0 (!%p193_p2), %v1000_v7  ;;  %971 = vmatpush3.bf16.msra.mxu1 (!%p193_p2), %v968_v3  ;;  %v976_v16 = vpack.c.bf16 (!%p193_p2), %v759_v13, %v758_v11  ;;  %v761_v19 = vld [vmem:[%s1363_s1 + $0xb8] sm:$0xff] (!%p193_p2)  ;;  %v301_v20 = vld [vmem:[%s1363_s1 + $0x30] sm:$0xff] (!%p193_p2) }
   0xa   : > { %1003 = vmatpush3.bf16.msra.mxu0 (!%p193_p2), %v1000_v7  ;;  %973 = vmatprep.subr.bf16.mxu1 (!%p193_p2), %v972_v8  ;;  %v1008_v17 = vpack.c.bf16 (!%p193_p2), %v300_v15, %v299_v14  ;;  %v302_v21 = vld [vmem:[%s1363_s1 + $0x38] sm:$0xff] (!%p193_p2)  ;;  %v980_v22 = vpack.c.bf16 (!%p193_p2), %v761_v19, %v760_v18  ;;  %v762_v23 = vld [vmem:[%s1363_s1 + $0xc0] sm:$0xff] (!%p193_p2)  ;;  %v763_v25 = vld [vmem:[%s1363_s1 + $0xc8] sm:$0xff] (!%p193_p2) }
   0xb   : > { %1005 = vmatprep.subr.bf16.mxu0 (!%p193_p2), %v1004_v12  ;;  %v1012_v24 = vpack.c.bf16 (!%p193_p2), %v302_v21, %v301_v20  ;;  %v303_v26 = vld [vmem:[%s1363_s1 + $0x40] sm:$0xff] (!%p193_p2)  ;;  %v304_v28 = vld [vmem:[%s1363_s1 + $0x48] sm:$0xff] (!%p193_p2)  ;;  %v984_v32 = vpack.c.bf16 (!%p193_p2), %v763_v25, %v762_v23  ;;  %v764_v34 = vld [vmem:[%s1363_s1 + $0xd0] sm:$0xff] (!%p193_p2) }
   0xc   : > { %v752_v29 = vld [vmem:[%s1364_s2] ss:$0 sm:$0xff] (!%p193_p2)  ;;  %v1016_v33 = vpack.c.bf16 (!%p193_p2), %v304_v28, %v303_v26  ;;  %v765_v35 = vld [vmem:[%s1363_s1 + $0xd8] sm:$0xff] (!%p193_p2)  ;;  %v305_v38 = vld [vmem:[%s1363_s1 + $0x50] sm:$0xff] (!%p193_p2) }
   0xd   : > { %s1371_s26 = smov (!%p227_p3, %s745_s26), 7  ;;  %975 = vmatpush3.bf16.msra.mxu1 %v972_v8  ;;  %v753_v30 = vld [vmem:[%s1365_s3] ss:$0 sm:$0xff]  ;;  %v306_v39 = vld [vmem:[%s1363_s1 + $0x58] sm:$0xff]  ;;  %v767_v41 = vld [vmem:[%s1363_s1 + $0xe8] sm:$0xff]  ;;  %v988_v43 = vpack.c.bf16 %v765_v35, %v764_v34  ;;  %s1373_s19 = smov (!%p240_p4, %s1140_s19), 3 }
   0xe   : > { %s792_s22 = sshll.u32 %s1371_s26, 4  ;;  %1007 = vmatpush3.bf16.msra.mxu0 %v1004_v12  ;;  %977 = vmatprep.subr.bf16.mxu1 %v976_v16  ;;  %v766_v40 = vld [vmem:[%s1363_s1 + $0xe0] sm:$0xff]  ;;  %vm1242_vm1 = vmneg %vm278_vm0  ;;  %v1020_v48 = vpack.c.bf16 %v306_v39, %v305_v38  ;;  %v308_v53 = vld [vmem:[%s1363_s1 + $0x68] sm:$0xff]  ;;  %s751_s26 = sshll.u32 %s1373_s19, 1 }
   0xf   : > { %s1201_s9 = scalar_lea.vmem %s1362_s0, %s792_s22  ;;  %1009 = vmatprep.subr.bf16.mxu0 %v1008_v17  ;;  %v307_v52 = vld [vmem:[%s1363_s1 + $0x60] sm:$0xff]  ;;  %v992_v54 = vpack.c.bf16 %v767_v41, %v766_v40  ;;  %v768_v59 = vld [vmem:[%s1363_s1 + $0xf0] sm:$0xff]  ;;  %v769_v60 = vld [vmem:[%s1363_s1 + $0xf8] sm:$0xff]  ;;  %s243_s21 = scalar_lea.vmem %s1367_s5, %s751_s26 }
  0x10   : > { %v244_v27 = vld [vmem:[%s1201_s9] sm:$0xff]  ;;  %v245_v37 = vld [vmem:[%s1201_s9 + $0x8] sm:$0xff]  ;;  %v246_v46 = vld [vmem:[%s1201_s9 + $0x10] sm:$0xff]  ;;  %v1024_v58 = vpack.c.bf16 %v308_v53, %v307_v52  ;;  %v996_v63 = vpack.c.bf16 %v769_v60, %v768_v59 }
  0x11   : > { %979 = vmatpush3.bf16.msra.mxu1 %v976_v16  ;;  %v255_v31 = vmul.f32 %v752_v29, %v244_v27  ;;  %v256_v45 = vmul.f32 %v752_v29, %v245_v37  ;;  %v247_v47 = vld [vmem:[%s1201_s9 + $0x18] sm:$0xff]  ;;  %v257_v50 = vmul.f32 %v752_v29, %v246_v46  ;;  %v309_v61 = vld [vmem:[%s1363_s1 + $0x70] sm:$0xff]  ;;  %v774_v4 = vld [vmem:[%s1363_s1 + $0x100] sm:$0xff]  ;;  %s238_s9 = scalar_lea.vmem %s1366_s4, %s792_s22 }
  0x12   : > { %1011 = vmatpush3.bf16.msra.mxu0 %v1008_v17  ;;  %981 = vmatprep.subr.bf16.mxu1 %v980_v22  ;;  %v258_v51 = vmul.f32 %v752_v29, %v247_v47  ;;  %v310_v62 = vld [vmem:[%s1363_s1 + $0x78] sm:$0xff]  ;;  %v775_v5 = vld [vmem:[%s1363_s1 + $0x108] sm:$0xff]  ;;  %v776_v10 = vld [vmem:[%s1363_s1 + $0x110] sm:$0xff] }
  0x13   : > { %1013 = vmatprep.subr.bf16.mxu0 %v1012_v24  ;;  %v266_v36 = vadd.f32 %v753_v30, %v255_v31  ;;  %v267_v55 = vadd.f32 %v753_v30, %v256_v45  ;;  %v268_v56 = vadd.f32 %v753_v30, %v257_v50  ;;  %v1028_v3 = vpack.c.bf16 %v310_v62, %v309_v61  ;;  %v777_v11 = vld [vmem:[%s1363_s1 + $0x118] sm:$0xff]  ;;  %v778_v17 = vld [vmem:[%s1363_s1 + $0x120] sm:$0xff]  ;;  %v779_v18 = vld [vmem:[%s1363_s1 + $0x128] sm:$0xff] }
  0x14   : > { %v269_v57 = vadd.f32 %v753_v30, %v258_v51  ;;  %v1032_v6 = vpack.c.bf16 %v775_v5, %v774_v4  ;;  %v1036_v14 = vpack.c.bf16 %v777_v11, %v776_v10  ;;  %v1040_v23 = vpack.c.bf16 %v779_v18, %v778_v17  ;;  %v781_v25 = vld [vmem:[%s1363_s1 + $0x138] sm:$0xff]  ;;  %v782_v29 = vld [vmem:[%s1363_s1 + $0x140] sm:$0xff]  ;;  %v783_v30 = vld [vmem:[%s1363_s1 + $0x148] sm:$0xff] }
  0x15   : > { %983 = vmatpush3.bf16.msra.mxu1 %v980_v22  ;;  %v270_v42 = vmax.f32 %v266_v36, 0.0  ;;  %v271_v0 = vmax.f32 %v267_v55, 0.0  ;;  %v272_v1 = vmax.f32 %v268_v56, 0.0  ;;  %v1048_v31 = vpack.c.bf16 %v783_v30, %v782_v29  ;;  %v786_v35 = vld [vmem:[%s1363_s1 + $0x160] sm:$0xff]  ;;  %v787_v36 = vld [vmem:[%s1363_s1 + $0x168] sm:$0xff]  ;;  %v788_v38 = vld [vmem:[%s1363_s1 + $0x170] sm:$0xff] }
  0x16   : > { %1015 = vmatpush3.bf16.msra.mxu0 %v1012_v24  ;;  %985 = vmatprep.subr.bf16.mxu1 %v984_v32  ;;  %v273_v2 = vmax.f32 %v269_v57, 0.0  ;;  %v780_v24 = vld [vmem:[%s1363_s1 + $0x130] sm:$0xff]  ;;  %v1056_v37 = vpack.c.bf16 %v787_v36, %v786_v35  ;;  %v789_v39 = vld [vmem:[%s1363_s1 + $0x178] sm:$0xff] }
  0x17   : > { %1017 = vmatprep.subr.bf16.mxu0 %v1016_v33  ;;  %v279_v49 = vrot.slane %v270_v42, 7  ;;  %886 = vmatprep.mubr.f32.mxu1 %v270_v42  ;;  %v1274_v7 = vrot.slane %v271_v0, 7  ;;  %v282_v8 = vrot.slane %v272_v1, 7  ;;  %v1044_v28 = vpack.c.bf16 %v781_v25, %v780_v24 }
  0x18   : > { %v1276_v9 = vrot.slane %v273_v2, 7  ;;  %v1060_v41 = vpack.c.bf16 %v789_v39, %v788_v38 }
  0x19   : > { %987 = vmatpush3.bf16.msra.mxu1 %v984_v32  ;;  %924 = vmatprep.mubr.msk.f32.mxu0 %vm1242_vm1, %v279_v49  ;;  %v291_v12 = vsel %vm278_vm0, 0.0, %v279_v49  ;;  %v1287_v13 = vsel %vm278_vm0, %v279_v49, %v1274_v7  ;;  %v292_v16 = vsel %vm278_vm0, 0.0, %v282_v8  ;;  %v784_v32 = vld [vmem:[%s1363_s1 + $0x150] sm:$0xff]  ;;  %v293_v42 = vsel %vm278_vm0, %v1274_v7, 0.0 }
  0x1a   : > { %1019 = vmatpush3.bf16.msra.mxu0 %v1016_v33  ;;  %989 = vmatprep.subr.bf16.mxu1 %v988_v43  ;;  %v1291_v15 = vsel %vm278_vm0, %v282_v8, %v1276_v9  ;;  %v504_v19 = vrot.slane %v1287_v13, 2  ;;  %v503_v20 = vrot.slane %v291_v12, 2  ;;  %v508_v22 = vrot.slane %v292_v16, 2  ;;  %v785_v33 = vld [vmem:[%s1363_s1 + $0x158] sm:$0xff] }
  0x1b   : > { %1021 = vmatprep.subr.bf16.mxu0 %v1020_v48  ;;  %v509_v21 = vrot.slane %v1291_v15, 2  ;;  %v1052_v34 = vpack.c.bf16 %v785_v33, %v784_v32  ;;  %v294_v40 = vsel %vm278_vm0, %v1276_v9, 0.0  ;;  %v506_v44 = vrot.slane %v293_v42, 2 }
  0x1c   : > { %v505_v26 = vsel %vm502_vm2, %v503_v20, %v504_v19 }
  0x1d   : > { %991 = vmatpush3.bf16.msra.mxu1 %v988_v43  ;;  %v510_v27 = vsel %vm502_vm2, %v508_v22, %v509_v21  ;;  %v511_v43 = vrot.slane %v294_v40, 2  ;;  %v507_v46 = vsel %vm502_vm2, %v504_v19, %v506_v44 }
  0x1e   : > { %1023 = vmatpush3.bf16.msra.mxu0 %v1020_v48  ;;  %993 = vmatprep.subr.bf16.mxu1 %v992_v54 }
  0x1f   : > { %1025 = vmatprep.subr.bf16.mxu0 %v1024_v58  ;;  %v512_v45 = vsel %vm502_vm2, %v509_v21, %v511_v43 }
  0x21   : > { %995 = vmatpush3.bf16.msra.mxu1 %v992_v54 }
  0x22   : > { %1027 = vmatpush3.bf16.msra.mxu0 %v1024_v58  ;;  %997 = vmatprep.subr.bf16.mxu1 %v996_v63 }
  0x23   : > { %1029 = vmatprep.subr.bf16.mxu0 %v1028_v3 }
  0x25   : > { %999 = vmatpush3.bf16.msra.mxu1 %v996_v63 }
  0x26   : > { %1031 = vmatpush3.bf16.msra.mxu0 %v1028_v3  ;;  %1064 = vmatprep.subr.bf16.mxu1 %v1032_v6 }
  0x27   : > { %1033 = vmatprep.subr.bf16.mxu0 %v1032_v6 }
  0x28   : > { %887 = vmatmul.mubr.f32.vlgmr.msra.gmra.mrb[0].mxu1 %v271_v0 }
  0x29   : > { %925 = vmatmul.mubr.f32.vlgmr.msra.gmra.mrb[0].mxu0 %v1287_v13  ;;  %1072 = vmatpush3.bf16.msra.mxu1 %v1032_v6 }
  0x2a   : > { %1035 = vmatpush3.bf16.msra.mxu0 %v1032_v6  ;;  %1065 = vmatprep.subr.bf16.mxu1 %v1036_v14 }
  0x2b   : > { %1037 = vmatprep.subr.bf16.mxu0 %v1036_v14  ;;  %889 = vmatprep.mubr.f32.mxu1 %v272_v1 }
  0x2c   : > { %927 = vmatprep.mubr.msk.f32.mxu0 %vm1242_vm1, %v282_v8  ;;  %890 = vmatmul.mubr.f32.gmra.mrb[2].mxu1 %v273_v2 }
  0x2d   : > { %1073 = vmatpush3.bf16.msra.mxu1 %v1036_v14  ;;  %928 = vmatmul.mubr.f32.gmra.mrb[2].mxu0 %v1291_v15 }
  0x2e   : > { %1039 = vmatpush3.bf16.msra.mxu0 %v1036_v14  ;;  %1066 = vmatprep.subr.bf16.mxu1 %v1040_v23 }
  0x2f   : > { %1041 = vmatprep.subr.bf16.mxu0 %v1040_v23  ;;  %962 = vmatprep.mubr.f32.mxu0 %v505_v26 }
  0x30   : > { %965 = vmatprep.mubr.f32.mxu1 %v510_v27 }
  0x31   : > { %1074 = vmatpush3.bf16.msra.mxu1 %v1040_v23 }
  0x32   : > { %1043 = vmatpush3.bf16.msra.mxu0 %v1040_v23  ;;  %1067 = vmatprep.subr.bf16.mxu1 %v1044_v28 }
  0x33   : > { %1045 = vmatprep.subr.bf16.mxu0 %v1044_v28 }
  0x35   : > { %1075 = vmatpush3.bf16.msra.mxu1 %v1044_v28 }
  0x36   : > { %1047 = vmatpush3.bf16.msra.mxu0 %v1044_v28  ;;  %1068 = vmatprep.subr.bf16.mxu1 %v1048_v31 }
  0x37   : > { %1049 = vmatprep.subr.bf16.mxu0 %v1048_v31 }
  0x39   : > { %1076 = vmatpush3.bf16.msra.mxu1 %v1048_v31 }
  0x3a   : > { %1051 = vmatpush3.bf16.msra.mxu0 %v1048_v31  ;;  %1069 = vmatprep.subr.bf16.mxu1 %v1052_v34 }
  0x3b   : > { %1053 = vmatprep.subr.bf16.mxu0 %v1052_v34 }
  0x3d   : > { %1077 = vmatpush3.bf16.msra.mxu1 %v1052_v34 }
  0x3e   : > { %1055 = vmatpush3.bf16.msra.mxu0 %v1052_v34  ;;  %1070 = vmatprep.subr.bf16.mxu1 %v1056_v37 }
  0x3f   : > { %1057 = vmatprep.subr.bf16.mxu0 %v1056_v37 }
  0x41   : > { %1078 = vmatpush3.bf16.msra.mxu1 %v1056_v37 }
  0x42   : > { %1059 = vmatpush3.bf16.msra.mxu0 %v1056_v37  ;;  %1071 = vmatprep.subr.bf16.mxu1 %v1060_v41 }
  0x43   : > { %1061 = vmatprep.subr.bf16.mxu0 %v1060_v41 }
  0x45   : > { %1079 = vmatpush3.bf16.msra.mxu1 %v1060_v41 }
  0x46   : > { %1063 = vmatpush3.bf16.msra.mxu0 %v1060_v41 }
  0x48   : > { %966 = vmatmul.mubr.f32.vlgmr.msra.gmra.mrb[4].mxu1 %v512_v45 }
  0x49   : > { %963 = vmatmul.mubr.f32.vlgmr.msra.gmra.mrb[0].mxu0 %v507_v46 }
  0xfb   : > { %v888_v47 = vpop.f32.mrb[0].mxu1 }
  0xfc   : > { %v394_v48 = vpop.f32.mrb[1].mxu1 }
  0xff   : > { %v891_v49 = vpop.f32.mrb[2].mxu1 }
 0x100   : > { %v929_v50 = vpop.f32.mrb[2].mxu0  ;;  %v404_v51 = vpop.f32.mrb[3].mxu1 }
 0x101   : > { %v495_v52 = vadd.f32 %v929_v50, %v891_v49  ;;  %v489_v53 = vpop.f32.mrb[3].mxu0 }
 0x102   : > { %v490_v54 = vadd.f32 %v489_v53, %v404_v51 }
 0x11b   : > { %v967_v55 = vpop.f32.mrb[4].mxu1 }
 0x11c   : > { %v964_v56 = vpop.f32.mrb[0].mxu0  ;;  %v622_v57 = vadd.f32 %v967_v55, %v495_v52  ;;  %v610_v58 = vpop.f32.mrb[5].mxu1 }
 0x11d   : > { %v1080_v59 = vadd.f32 %v964_v56, %v888_v47  ;;  %v600_v60 = vpop.f32.mrb[1].mxu0  ;;  %v621_v61 = vadd.f32 %v610_v58, %v490_v54 }
 0x11e   : > { %v1081_v62 = vadd.f32 %v600_v60, %v394_v48  ;;  %626 = vst [vmem:[%s238_s9 + $0x18] sm:$0xff] %v622_v57  ;;  %v639_v5 = vmul.f32 %v622_v57, %v622_v57 }
 0x11f   : > { %624 = vst [vmem:[%s238_s9 + $0x8] sm:$0xff] %v1080_v59  ;;  %v637_v63 = vmul.f32 %v1080_v59, %v1080_v59  ;;  %625 = vst [vmem:[%s238_s9 + $0x10] sm:$0xff] %v621_v61  ;;  %v638_v4 = vmul.f32 %v621_v61, %v621_v61 }
 0x120   : > { %623 = vst [vmem:[%s238_s9] sm:$0xff] %v1081_v62  ;;  %v627_v0 = vadd.f32 %v1081_v62, %v1080_v59  ;;  %v636_v1 = vmul.f32 %v1081_v62, %v1081_v62 }
 0x122   : > { %v640_v2 = vadd.f32 %v637_v63, %v636_v1  ;;  %v628_v3 = vadd.f32 %v627_v0, %v621_v61 }
 0x124   : > { %v629_v6 = vadd.f32 %v628_v3, %v622_v57  ;;  %v641_v7 = vadd.f32 %v640_v2, %v638_v4 }
 0x126   : > { %v630_v8 = vrot.slane %v629_v6, 4  ;;  %v642_v9 = vadd.f32 %v641_v7, %v639_v5 }
 0x128   : > { %v631_v10 = vadd.f32 %v630_v8, %v629_v6  ;;  %v643_v11 = vrot.slane %v642_v9, 4 }
 0x12a   : > { %v632_v12 = vrot.slane %v631_v10, 2  ;;  %v644_v13 = vadd.f32 %v643_v11, %v642_v9 }
 0x12c   : > { %v633_v14 = vadd.f32 %v632_v12, %v631_v10  ;;  %v645_v15 = vrot.slane %v644_v13, 2 }
 0x12e   : > { %v634_v16 = vrot.slane %v633_v14, 1  ;;  %v646_v17 = vadd.f32 %v645_v15, %v644_v13 }
 0x130   : > { %v647_v18 = vrot.slane %v646_v17, 1  ;;  %v635_v19 = vadd.f32 %v634_v16, %v633_v14 }
 0x132   : > { %v648_v20 = vadd.f32 %v647_v18, %v646_v17 }
 0x134   : > { %v649_v21 = vsel %vm278_vm0, %v635_v19, %v648_v20 }
 0x135   : > { %650 = vst [vmem:[%s243_s21] sm:$0x3] %v649_v21 }
 0x136 PF: > { %s16_s18 = sadd.s32 1, %s1102_s18  }
 0x137   : > { %p13_p5 = scmp.ge.s32.totalorder %s16_s18, 6  }
 0x139   :  { %15 = sbr.rel (!%p13_p5) target bundleno = 1 (0x1), region = 80 }

// kernel: double_conv_floor_3d.5
= control target key start
LH: loop header
LB: loop body
LE: loop exit
PB: predicated region body
PF: predicated region fallthrough
CT: control target
= control target key end

     0   :  { %s324_s12 = smov 0   ;;  %s347_s0 = inlined_call_operand.vmem [shape: f32[8,16,128], index: 0, kind: input, shape index: {}, may-alias: {0,3}]   ;;  %s348_s1 = inlined_call_operand.vmem [shape: f32[1,128], index: 1, kind: input, shape index: {}]   ;;  %s349_s2 = inlined_call_operand.vmem [shape: f32[1,128], index: 2, kind: input, shape index: {}]   ;;  %s350_s3 = inlined_call_operand.vmem [shape: f32[8,16,128], index: 3, kind: output, shape index: {}, may-alias: {0,3}]  }
   0x1 LB: > { %s271_s13 = sadd.s32 4294967295, %s302_s12   ;;  %p275_p0 = scmp.ge.s32.totalorder %s302_s12, 1  ;;  %s302_s12 = sphi %s324_s12, %s13_s12  }
   0x2   : > { %p139_p1 = scmp.lt.s32.totalorder %s302_s12, 5 }
   0x4   : > { %p140_p2 = pnand %p275_p0, %p139_p1 }
   0x5   : > { %s276_s14 = sshll.u32 (!%p140_p2), %s271_s13, 1  ;;  %v282_v0 = vld [vmem:[%s348_s1] ss:$0 sm:$0xff] (!%p140_p2) }
   0x6   : > { %143 = sbr.rel (%p140_p2) target bundleno = 25 (0x19), region = 32  ;;  %p166_p3 = scmp.lt.s32.totalorder (!%p140_p2), %s276_s14, 7  ;;  %v283_v1 = vld [vmem:[%s349_s2] ss:$0 sm:$0xff] (!%p140_p2) }
   0xd   : > { %s352_s14 = smov (!%p166_p3, %s276_s14), 7 }
   0xe   : > { %s286_s15 = sshll.u32 %s352_s14, 4 }
   0xf   : > { %s170_s20 = scalar_lea.vmem %s347_s0, %s286_s15  ;;  %s177_s25 = scalar_lea.vmem %s350_s3, %s286_s15 }
  0x10   : > { %v179_v2 = vld [vmem:[%s170_s20] sm:$0xff]  ;;  %v181_v3 = vld [vmem:[%s170_s20 + $0x10] sm:$0xff]  ;;  %v180_v4 = vld [vmem:[%s170_s20 + $0x8] sm:$0xff] }
  0x11   : > { %v190_v5 = vmul.f32 %v282_v0, %v179_v2  ;;  %v192_v6 = vmul.f32 %v282_v0, %v181_v3  ;;  %v182_v7 = vld [vmem:[%s170_s20 + $0x18] sm:$0xff]  ;;  %v191_v8 = vmul.f32 %v282_v0, %v180_v4 }
  0x12   : > { %v193_v9 = vmul.f32 %v282_v0, %v182_v7 }
  0x13   : > { %v201_v10 = vadd.f32 %v283_v1, %v190_v5  ;;  %v203_v11 = vadd.f32 %v283_v1, %v192_v6  ;;  %v202_v12 = vadd.f32 %v283_v1, %v191_v8 }
  0x14   : > { %v204_v13 = vadd.f32 %v283_v1, %v193_v9 }
  0x15   : > { %v205_v14 = vmax.f32 %v201_v10, 0.0  ;;  %v206_v15 = vmax.f32 %v202_v12, 0.0  ;;  %v207_v16 = vmax.f32 %v203_v11, 0.0 }
  0x16   : > { %v208_v17 = vmax.f32 %v204_v13, 0.0 }
  0x17   : > { %209 = vst [vmem:[%s177_s25] sm:$0xff] %v205_v14  ;;  %210 = vst [vmem:[%s177_s25 + $0x8] sm:$0xff] %v206_v15 }
  0x18   : > { %211 = vst [vmem:[%s177_s25 + $0x10] sm:$0xff] %v207_v16  ;;  %212 = vst [vmem:[%s177_s25 + $0x18] sm:$0xff] %v208_v17 }
  0x19 PF: > { %s13_s12 = sadd.s32 1, %s302_s12  }
  0x1a   : > { %p10_p4 = scmp.ge.s32.totalorder %s13_s12, 6  }
  0x1c   :  { %12 = sbr.rel (!%p10_p4) target bundleno = 1 (0x1), region = 62 }

</bundles_post_ra>
